<compile_context>
chip_gen: v7x
topology: tpu7x:2x2x1
jax: 0.10.0
libtpu: 0.0.40
codegen_flags: <defaults>
</compile_context>

<pallas_src>
import functools

import jax
import jax.numpy as jnp
from jax.experimental import pallas as pl
from jax.experimental.pallas import tpu as pltpu

# Fixed (non-trainable) Sobel filter taps, identical to the module defaults.
F_X = ((-1.0, 0.0, 1.0), (-2.0, 0.0, 2.0), (-1.0, 0.0, 1.0))
F_Y = ((-1.0, -2.0, -1.0), (0.0, 0.0, 0.0), (1.0, 2.0, 1.0))

_VMEM_LIMIT_BYTES = 32 << 20    # explicit scoped-VMEM limit (v5e default: 16 MiB)
_WORKING_SET_BUDGET = 24 << 20  # total live bytes allowed per grid step
_LIVE_BLOCKS = 14               # ~2 in + 4 out (double-buffered) + ~7 f32 temps + slack


def _sobel_kernel(mask_ref, x_ref, dx_ref, dy_ref, *, W):
    # mask_ref: (4, HWp)      resident 0/1 edge masks [left, right, top, bottom]
    # x_ref   : (p_tile, HWp) flattened image planes (one plane per sublane row)
    # dx_ref  : (p_tile, HWp) horizontal-gradient output (F_X taps)
    # dy_ref  : (p_tile, HWp) vertical-gradient output   (F_Y taps)
    x = x_ref[...].astype(jnp.float32)
    hw = x.shape[1]  # padded plane width (multiple of 128)

    m_l = mask_ref[0:1, :]  # zero where w == 0   (and in the lane padding)
    m_r = mask_ref[1:2, :]  # zero where w == W-1 (and in the lane padding)
    m_t = mask_ref[2:3, :]  # zero where h == 0   (and in the lane padding)
    m_b = mask_ref[3:4, :]  # zero where h == H-1 (and in the lane padding)

    def roll_fwd(a, k):  # out[:, l] = a[:, l - k]   (cyclic; masks kill the wrap)
        return pltpu.roll(a, k, axis=1)

    def roll_bwd(a, k):  # out[:, l] = a[:, l + k]   (cyclic; masks kill the wrap)
        return pltpu.roll(a, hw - k, axis=1)

    left = m_l * roll_fwd(x, 1)   # x[h, w-1], zero beyond the left image edge
    right = m_r * roll_bwd(x, 1)  # x[h, w+1], zero beyond the right image edge

    # Separable 3x3 cross-correlation (matches F.conv2d):
    #   F_X = [1,2,1]^T (vertical) x [-1,0,1] (horizontal)
    #   F_Y = [-1,0,1]^T (vertical) x [ 1,2,1] (horizontal)
    hd = right - left              # horizontal [-1, 0, 1]
    hs = left + 2.0 * x + right    # horizontal [ 1, 2, 1]

    up = lambda a: m_t * roll_fwd(a, W)    # row h-1 of a, zero beyond top edge
    down = lambda a: m_b * roll_bwd(a, W)  # row h+1 of a, zero beyond bottom edge

    dx = up(hd) + 2.0 * hd + down(hd)      # vertical [ 1, 2, 1]
    dy = down(hs) - up(hs)                 # vertical [-1, 0, 1]

    dx_ref[...] = dx.astype(dx_ref.dtype)
    dy_ref[...] = dy.astype(dy_ref.dtype)


def _edge_masks(H, W, HWp):
    """(4, HWp) f32 masks [left, right, top, bottom]; zero in the lane padding."""
    lane = jnp.arange(HWp, dtype=jnp.int32)
    row, col = lane // W, lane % W
    valid = lane < H * W
    m_l = (col >= 1) & valid
    m_r = (col <= W - 2) & valid
    m_t = (row >= 1) & valid
    m_b = (row <= H - 2) & valid
    return jnp.stack([m_l, m_r, m_t, m_b], axis=0).astype(jnp.float32)


def _pick_p_tile(P, HWp):
    """Largest divisor-of-P sublane tile whose full working set fits the budget."""
    if P % 8 != 0:
        return P  # block sublane dim equals the full array dim -> still legal
    max_rows = max(8, _WORKING_SET_BUDGET // (_LIVE_BLOCKS * HWp * 4))
    tile = 8
    cand = 8
    while cand <= P:
        if P % cand == 0 and cand <= max_rows:
            tile = cand
        cand += 8
    return tile


def sobel(image):
    """image: (N, C, H, W). Returns [dx, dy], Sobel gradients (conv2d, padding=1)."""
    N, C, H, W = image.shape
    P, HW = N * C, H * W
    HWp = ((HW + 127) // 128) * 128  # lane-dense (unmasked) vector stores
    out_dtype = jnp.promote_types(image.dtype, jnp.float32)

    x2 = image.reshape(P, HW)        # contiguous collapse: no data movement
    if HWp != HW:
        x2 = jnp.pad(x2, ((0, 0), (0, HWp - HW)))
    masks = _edge_masks(H, W, HWp)

    p_tile = _pick_p_tile(P, HWp)
    # TODO(synk): when a single (p_tile, HWp) working set no longer fits the
    # VMEM budget (large planes, v7x first), add a second grid axis tiling H
    # with a 1-row halo instead of growing the lane width.
    grid = (pl.cdiv(P, p_tile),)

    dx2, dy2 = pl.pallas_call(
        functools.partial(_sobel_kernel, W=W),
        out_shape=(
            jax.ShapeDtypeStruct((P, HWp), out_dtype),
            jax.ShapeDtypeStruct((P, HWp), out_dtype),
        ),
        grid_spec=pltpu.PrefetchScalarGridSpec(
            num_scalar_prefetch=0,
            grid=grid,
            in_specs=[
                pl.BlockSpec((4, HWp), lambda i: (0, 0)),        # resident masks
                pl.BlockSpec((p_tile, HWp), lambda i: (i, 0)),
            ],
            out_specs=(
                pl.BlockSpec((p_tile, HWp), lambda i: (i, 0)),
                pl.BlockSpec((p_tile, HWp), lambda i: (i, 0)),
            ),
        ),
        compiler_params=pltpu.CompilerParams(
            dimension_semantics=("parallel",),
            vmem_limit_bytes=_VMEM_LIMIT_BYTES),
    )(masks, x2)

    dx = dx2[:, :HW].reshape(N, C, H, W)
    dy = dy2[:, :HW].reshape(N, C, H, W)
    return [dx, dy]


def _sobel_reference(image):
    """Plain-JAX reference using lax.conv (matches F.conv2d semantics)."""
    D = jnp.stack(
        [jnp.asarray(F_X, jnp.float32), jnp.asarray(F_Y, jnp.float32)],
        axis=0)[:, None, :, :]  # (2, 1, 3, 3)
    N, C, H, W = image.shape
    outs = []
    for c in range(C):
        ch = image[:, c:c + 1].astype(jnp.float32)
        g = jax.lax.conv_general_dilated(
            ch, D, window_strides=(1, 1), padding=((1, 1), (1, 1)),
            dimension_numbers=("NCHW", "OIHW", "NCHW"))
        outs.append(g)
    dx = jnp.concatenate([g[:, 0:1] for g in outs], axis=1)
    dy = jnp.concatenate([g[:, 1:2] for g in outs], axis=1)
    return [dx, dy]


if __name__ == "__main__":
    key = jax.random.PRNGKey(0)
    x = jax.random.normal(key, (2, 4, 16, 16), dtype=jnp.float32)

    dx, dy = sobel(x)
    jax.block_until_ready(dx)
    jax.block_until_ready(dy)

    dx_ref, dy_ref = _sobel_reference(x)
    assert dx.shape == (2, 4, 16, 16) and dy.shape == (2, 4, 16, 16)
    assert jnp.allclose(dx, dx_ref, atol=1e-4, rtol=1e-4), "dx mismatch vs reference"
    assert jnp.allclose(dy, dy_ref, atol=1e-4, rtol=1e-4), "dy mismatch vs reference"

    print("KERNEL_OK")
</pallas_src>

<mosaic_0001>
module attributes {stable_mosaic.version = 11 : i64} {
  func.func @_sobel_kernel(%arg0: i32, %arg1: memref<4x256xf32, #tpu.memory_space<vmem>>, %arg2: memref<8x256xf32, #tpu.memory_space<vmem>>, %arg3: memref<8x256xf32, #tpu.memory_space<vmem>>, %arg4: memref<8x256xf32, #tpu.memory_space<vmem>>) attributes {dimension_semantics = [#tpu.dimension_semantics<parallel>], iteration_bounds = array<i64: 1>, scalar_prefetch = 0 : i64, scratch_operands = 0 : i64, tpu.core_type = #tpu.core_type<tc>, window_params = [{pipeline_mode = #tpu.pipeline_mode<synchronous>, transform_indices = @transform_0, window_bounds = array<i64: 4, 256>}, {transform_indices = @transform_1, window_bounds = array<i64: 8, 256>}, {transform_indices = @transform_2, window_bounds = array<i64: 8, 256>}, {transform_indices = @transform_3, window_bounds = array<i64: 8, 256>}]} {
    %c0 = arith.constant 0 : index
    %c0_0 = arith.constant 0 : index
    %0 = vector.load %arg2[%c0, %c0_0] : memref<8x256xf32, #tpu.memory_space<vmem>>, vector<8x256xf32>
    %c0_1 = arith.constant 0 : index
    %c0_2 = arith.constant 0 : index
    %1 = vector.load %arg1[%c0_1, %c0_2] : memref<4x256xf32, #tpu.memory_space<vmem>>, vector<1x256xf32>
    %c1 = arith.constant 1 : index
    %c0_3 = arith.constant 0 : index
    %2 = vector.load %arg1[%c1, %c0_3] : memref<4x256xf32, #tpu.memory_space<vmem>>, vector<1x256xf32>
    %c2 = arith.constant 2 : index
    %c0_4 = arith.constant 0 : index
    %3 = vector.load %arg1[%c2, %c0_4] : memref<4x256xf32, #tpu.memory_space<vmem>>, vector<1x256xf32>
    %c3 = arith.constant 3 : index
    %c0_5 = arith.constant 0 : index
    %4 = vector.load %arg1[%c3, %c0_5] : memref<4x256xf32, #tpu.memory_space<vmem>>, vector<1x256xf32>
    %c1_i32 = arith.constant 1 : i32
    %5 = tpu.dynamic_rotate %0 by %c1_i32 dim 1 : vector<8x256xf32>, i32 -> vector<8x256xf32>
    %6 = vector.broadcast %1 : vector<1x256xf32> to vector<8x256xf32>
    %7 = arith.mulf %6, %5 : vector<8x256xf32>
    %c255_i32 = arith.constant 255 : i32
    %8 = tpu.dynamic_rotate %0 by %c255_i32 dim 1 : vector<8x256xf32>, i32 -> vector<8x256xf32>
    %9 = vector.broadcast %2 : vector<1x256xf32> to vector<8x256xf32>
    %10 = arith.mulf %9, %8 : vector<8x256xf32>
    %11 = arith.subf %10, %7 : vector<8x256xf32>
    %cst = arith.constant 2.000000e+00 : f32
    %12 = vector.broadcast %cst : f32 to vector<8x256xf32>
    %13 = arith.mulf %12, %0 : vector<8x256xf32>
    %14 = arith.addf %7, %13 : vector<8x256xf32>
    %15 = arith.addf %14, %10 : vector<8x256xf32>
    %c16_i32 = arith.constant 16 : i32
    %16 = tpu.dynamic_rotate %11 by %c16_i32 dim 1 : vector<8x256xf32>, i32 -> vector<8x256xf32>
    %17 = vector.broadcast %3 : vector<1x256xf32> to vector<8x256xf32>
    %18 = arith.mulf %17, %16 : vector<8x256xf32>
    %cst_6 = arith.constant 2.000000e+00 : f32
    %19 = vector.broadcast %cst_6 : f32 to vector<8x256xf32>
    %20 = arith.mulf %19, %11 : vector<8x256xf32>
    %21 = arith.addf %18, %20 : vector<8x256xf32>
    %c240_i32 = arith.constant 240 : i32
    %22 = tpu.dynamic_rotate %11 by %c240_i32 dim 1 : vector<8x256xf32>, i32 -> vector<8x256xf32>
    %23 = vector.broadcast %4 : vector<1x256xf32> to vector<8x256xf32>
    %24 = arith.mulf %23, %22 : vector<8x256xf32>
    %25 = arith.addf %21, %24 : vector<8x256xf32>
    %c240_i32_7 = arith.constant 240 : i32
    %26 = tpu.dynamic_rotate %15 by %c240_i32_7 dim 1 : vector<8x256xf32>, i32 -> vector<8x256xf32>
    %27 = vector.broadcast %4 : vector<1x256xf32> to vector<8x256xf32>
    %28 = arith.mulf %27, %26 : vector<8x256xf32>
    %c16_i32_8 = arith.constant 16 : i32
    %29 = tpu.dynamic_rotate %15 by %c16_i32_8 dim 1 : vector<8x256xf32>, i32 -> vector<8x256xf32>
    %30 = vector.broadcast %3 : vector<1x256xf32> to vector<8x256xf32>
    %31 = arith.mulf %30, %29 : vector<8x256xf32>
    %32 = arith.subf %28, %31 : vector<8x256xf32>
    %c0_9 = arith.constant 0 : index
    %c0_10 = arith.constant 0 : index
    %33 = vector.load %arg3[%c0_9, %c0_10] : memref<8x256xf32, #tpu.memory_space<vmem>>, vector<8x256xf32>
    tpu.vector_store %arg3[%c0_9, %c0_10], %25 {strides = array<i32>} : memref<8x256xf32, #tpu.memory_space<vmem>>, vector<8x256xf32>,
    %c0_11 = arith.constant 0 : index
    %c0_12 = arith.constant 0 : index
    %34 = vector.load %arg4[%c0_11, %c0_12] : memref<8x256xf32, #tpu.memory_space<vmem>>, vector<8x256xf32>
    tpu.vector_store %arg4[%c0_11, %c0_12], %32 {strides = array<i32>} : memref<8x256xf32, #tpu.memory_space<vmem>>, vector<8x256xf32>,
    return
  }
  func.func @transform_0(%arg0: i32) -> (i32, i32) {
    %c0_i32 = arith.constant 0 : i32
    %c0_i32_0 = arith.constant 0 : i32
    %c0_i32_1 = arith.constant 0 : i32
    return %c0_i32, %c0_i32_0 : i32, i32
  }
  func.func @transform_1(%arg0: i32) -> (i32, i32) {
    %c0_i32 = arith.constant 0 : i32
    %c0_i32_0 = arith.constant 0 : i32
    return %arg0, %c0_i32 : i32, i32
  }
  func.func @transform_2(%arg0: i32) -> (i32, i32) {
    %c0_i32 = arith.constant 0 : i32
    %c0_i32_0 = arith.constant 0 : i32
    return %arg0, %c0_i32 : i32, i32
  }
  func.func @transform_3(%arg0: i32) -> (i32, i32) {
    %c0_i32 = arith.constant 0 : i32
    %c0_i32_0 = arith.constant 0 : i32
    return %arg0, %c0_i32 : i32, i32
  }
}

</mosaic_0001>

<bundles_post_ra>
// kernel: tpu_custom_call.1
= control target key start
LH: loop header
LB: loop body
LE: loop exit
PB: predicated region body
PF: predicated region fallthrough
CT: control target
= control target key end

     0   :  { %9 = vsyncpa [#allocation3], 0  ;;  %s398_s0 = inlined_call_operand.hbm [shape: f32[4,256], index: 0, kind: input, shape index: {}]   ;;  %s399_s1 = inlined_call_operand.hbm [shape: f32[8,256], index: 1, kind: input, shape index: {}]   ;;  %s400_s2 = inlined_call_operand.hbm [shape: f32[8,256], index: 2, kind: output, shape index: {0}]   ;;  %s401_s3 = inlined_call_operand.hbm [shape: f32[8,256], index: 3, kind: output, shape index: {1}]  }
   0x1   :  { %10 = vsyncpa [#allocation6], 0 }
   0x2   :  { %11 = vsyncpa [#allocation4], 0 }
   0x3   :  { %12 = vsyncpa [#allocation9], 0  ;;  %s300_s12 = smov [#allocation2]   ;;  %s301_s14 = smov [#allocation5]  }
   0x4   :  { %s19_s13 = sshll.u32 %s300_s12, 4  ;;  %s29_s15 = sshll.u32 %s301_s14, 4  ;;  %s20_s13 = int_to_ptr.vmem [resolvable:$true] %s19_s13  ;;  %s30_s15 = int_to_ptr.vmem [resolvable:$true] %s29_s15 }
   0x5   :  { %s204_s18 = scalar_lea.hbm %s398_s0, 128 }
   0x6   :  { %p205_p0 = scmp.ne.s32.totalorder %s398_s0, %s204_s18  ;;  %p208_p1 = scmp.lt.u32.totalorder %s204_s18, %s398_s0 }
   0x8   :  { %p210_p2 = pnand %p208_p1, %p205_p0 }
   0xa   :  { %213 = shalt.err (!%p210_p2)
}
   0xb   :  { %s214_s23 = scalar_lea.vmem %s20_s13, 128  ;;  %p219_p4 = scmp.lt.s32.totalorder %s20_s13, %s20_s13 }
   0xc   :  { %p215_p3 = scmp.ne.s32.totalorder %s20_s13, %s214_s23  ;;  %p220_p5 = scmp.lt.s32.totalorder %s214_s23, %s214_s23 }
   0xe   :  { %p221_p6 = por %p220_p5, %p219_p4 }
  0x10   :  { %p222_p7 = pnand %p221_p6, %p215_p3 }
  0x12   :  { %225 = shalt.err (!%p222_p7)
}
  0x13   :  { %22 = dma.hbm_to_vmem [thread:$0]  %s398_s0, 128, %s20_s13, [#allocation3]  }
  0x14   :  { %s226_s28 = scalar_lea.hbm %s399_s1, 256 }
  0x15   :  { %p227_p8 = scmp.ne.s32.totalorder %s399_s1, %s226_s28  ;;  %p230_p9 = scmp.lt.u32.totalorder %s226_s28, %s399_s1 }
  0x17   :  { %p232_p10 = pnand %p230_p9, %p227_p8 }
  0x19   :  { %235 = shalt.err (!%p232_p10)
}
  0x1a   :  { %s236_s6 = scalar_lea.vmem %s30_s15, 256  ;;  %p241_p12 = scmp.lt.s32.totalorder %s30_s15, %s30_s15 }
  0x1b   :  { %p237_p11 = scmp.ne.s32.totalorder %s30_s15, %s236_s6  ;;  %p242_p13 = scmp.lt.s32.totalorder %s236_s6, %s236_s6 }
  0x1d   :  { %p243_p0 = por %p242_p13, %p241_p12 }
  0x1f   :  { %p244_p1 = pnand %p243_p0, %p237_p11 }
  0x21   :  { %247 = shalt.err (!%p244_p1)
}
  0x22   :  { %32 = dma.hbm_to_vmem [thread:$0]  %s399_s1, 256, %s30_s15, [#allocation6]  }
  0x23   :  { %292 = dma.done.wait [#allocation3], 128  }
  0x24   :  { %293 = vsyncadd [#allocation3], 4294967168 }
  0x25   :  { %294 = dma.done.wait [#allocation6], 256  }
  0x26   :  { %295 = vsyncadd [#allocation6], 4294967040  ;;  %v39_v0 = vld [vmem:[#allocation5] sm:$0xff]  ;;  %s302_s8 = smov 127   ;;  %s303_s9 = smov 1   ;;  %v40_v1 = vld [vmem:[#allocation5 + $0x8] sm:$0xff]  ;;  %v52_v2 = vlaneseq }
  0x27   :  { %70 = vrot.lane.b32.xlu1 %v39_v0, %s302_s8  ;;  %48 = vrot.lane.b32.xlu0 %v39_v0, %s303_s9  ;;  %v43_v7 = vld [vmem:[#allocation2 + $0x1] ss:$4 sm:$0x3]  ;;  %v41_v8 = vld [vmem:[#allocation2] ss:$4 sm:$0x3] }
  0x28   :  { %v59_v3 = vshrl.u32 %v52_v2, 7  ;;  %v352_v4 = vand.u32 127, %v52_v2  ;;  %v92_v25 = vmul.f32 2.0, %v39_v0  ;;  %v93_v26 = vmul.f32 2.0, %v40_v1  ;;  %s304_s1 = smov 16   ;;  %s305_s10 = smov 112  }
  0x29   :  { %v45_v33 = vld [vmem:[#allocation2 + $0x2] ss:$4 sm:$0x3]  ;;  %v47_v36 = vld [vmem:[#allocation2 + $0x3] ss:$4 sm:$0x3] }
  0x2a   :  { %v60_v5 = vsub.s32 0, %v59_v3  ;;  %v64_v6 = vsub.s32 1, %v59_v3  ;;  %vm74_vm0 = vcmp.lt.s32.totalorder %v352_v4, 127  ;;  %vm54_vm1 = vcmp.lt.s32.totalorder %v352_v4, 1  ;;  %s306_s11 = smov [#allocation7]  }
  0x2b   :  { %72 = vrot.lane.b32.xlu1 %v40_v1, %s302_s8  ;;  %50 = vrot.lane.b32.xlu0 %v40_v1, %s303_s9  ;;  %vm102_vm2 = vcmp.lt.s32.totalorder %v352_v4, 16  ;;  %vm126_vm3 = vcmp.lt.s32.totalorder %v352_v4, 112  ;;  %s172_s12 = sshll.u32 %s306_s11, 4  ;;  %s173_s12 = int_to_ptr.vmem [resolvable:$true] %s172_s12 }
  0x2c   :  { %v81_v11 = vrot.slane %v43_v7, %v60_v5  ;;  %v85_v12 = vrot.slane %v43_v7, %v64_v6  ;;  %v61_v13 = vrot.slane %v41_v8, %v60_v5  ;;  %v65_v14 = vrot.slane %v41_v8, %v64_v6  ;;  %s248_s13 = scalar_lea.vmem %s173_s12, 256  ;;  %p253_p3 = scmp.lt.s32.totalorder %s173_s12, %s173_s12 }
  0x2d   :  { %v109_v34 = vrot.slane %v45_v33, %v60_v5  ;;  %v113_v35 = vrot.slane %v45_v33, %v64_v6  ;;  %v133_v43 = vrot.slane %v47_v36, %v60_v5  ;;  %v137_v44 = vrot.slane %v47_v36, %v64_v6  ;;  %p249_p2 = scmp.ne.s32.totalorder %s173_s12, %s248_s13  ;;  %p254_p4 = scmp.lt.s32.totalorder %s248_s13, %s248_s13 }
  0x2f   :  { %p255_p5 = por %p254_p4, %p253_p3 }
  0x31   :  { %p256_p6 = pnand %p255_p5, %p249_p2 }
  0x99   :  { %v71_v9 = vpop.permute.xlu1 %70  ;;  %v49_v10 = vpop.permute.xlu0 %48 }
  0x9d   :  { %v73_v15 = vpop.permute.xlu1 %72  ;;  %v51_v16 = vpop.permute.xlu0 %50 }
  0x9e   :  { %v75_v17 = vsel %vm74_vm0, %v71_v9, %v73_v15  ;;  %v76_v18 = vsel %vm74_vm0, %v73_v15, %v71_v9  ;;  %v55_v19 = vsel %vm54_vm1, %v49_v10, %v51_v16  ;;  %v56_v20 = vsel %vm54_vm1, %v51_v16, %v49_v10 }
  0x9f   :  { %v88_v21 = vmul.f32 %v81_v11, %v75_v17  ;;  %v89_v22 = vmul.f32 %v85_v12, %v76_v18  ;;  %v68_v23 = vmul.f32 %v61_v13, %v56_v20  ;;  %v69_v24 = vmul.f32 %v65_v14, %v55_v19 }
  0xa1   :  { %v90_v27 = vsub.f32 %v88_v21, %v68_v23  ;;  %v91_v28 = vsub.f32 %v89_v22, %v69_v24  ;;  %v94_v29 = vadd.f32 %v92_v25, %v68_v23  ;;  %v95_v30 = vadd.f32 %v93_v26, %v69_v24 }
  0xa3   :  { %98 = vrot.lane.b32.xlu0 %v90_v27, %s304_s1  ;;  %100 = vrot.lane.b32.xlu1 %v91_v28, %s304_s1  ;;  %v97_v31 = vadd.f32 %v95_v30, %v89_v22  ;;  %v96_v32 = vadd.f32 %v94_v29, %v88_v21  ;;  %v118_v45 = vmul.f32 2.0, %v90_v27  ;;  %v119_v46 = vmul.f32 2.0, %v91_v28 }
  0xa7   :  { %122 = vrot.lane.b32.xlu0 %v90_v27, %s305_s10  ;;  %124 = vrot.lane.b32.xlu1 %v91_v28, %s305_s10 }
  0xab   :  { %146 = vrot.lane.b32.xlu1 %v97_v31, %s305_s10  ;;  %144 = vrot.lane.b32.xlu0 %v96_v32, %s305_s10 }
  0xaf   :  { %154 = vrot.lane.b32.xlu1 %v97_v31, %s304_s1  ;;  %152 = vrot.lane.b32.xlu0 %v96_v32, %s304_s1 }
 0x115   :  { %v99_v37 = vpop.permute.xlu0 %98  ;;  %v101_v38 = vpop.permute.xlu1 %100 }
 0x116   :  { %v103_v39 = vsel %vm102_vm2, %v99_v37, %v101_v38  ;;  %v104_v40 = vsel %vm102_vm2, %v101_v38, %v99_v37 }
 0x117   :  { %v116_v41 = vmul.f32 %v109_v34, %v104_v40  ;;  %v117_v42 = vmul.f32 %v113_v35, %v103_v39 }
 0x119   :  { %v123_v47 = vpop.permute.xlu0 %122  ;;  %v125_v48 = vpop.permute.xlu1 %124  ;;  %v120_v51 = vadd.f32 %v118_v45, %v116_v41  ;;  %v121_v52 = vadd.f32 %v119_v46, %v117_v42 }
 0x11a   :  { %v127_v49 = vsel %vm126_vm3, %v123_v47, %v125_v48  ;;  %v128_v50 = vsel %vm126_vm3, %v125_v48, %v123_v47 }
 0x11b   :  { %v140_v53 = vmul.f32 %v133_v43, %v127_v49  ;;  %v141_v54 = vmul.f32 %v137_v44, %v128_v50 }
 0x11d   :  { %v142_v55 = vadd.f32 %v140_v53, %v120_v51  ;;  %v143_v56 = vadd.f32 %v141_v54, %v121_v52  ;;  %v147_v57 = vpop.permute.xlu1 %146  ;;  %v145_v58 = vpop.permute.xlu0 %144 }
 0x11e   :  { %v148_v59 = vsel %vm126_vm3, %v145_v58, %v147_v57  ;;  %v149_v60 = vsel %vm126_vm3, %v147_v57, %v145_v58 }
 0x11f   :  { %162 = vst [vmem:[#allocation7] sm:$0xff] %v142_v55  ;;  %163 = vst [vmem:[#allocation7 + $0x8] sm:$0xff] %v143_v56 }
 0x120   :  { %259 = shalt.err (!%p256_p6)
}
 0x121   :  { %s260_s16 = scalar_lea.hbm %s400_s2, 256 }
 0x122   :  { %p261_p7 = scmp.ne.s32.totalorder %s400_s2, %s260_s16  ;;  %p264_p8 = scmp.lt.u32.totalorder %s260_s16, %s400_s2 }
 0x124   :  { %p266_p9 = pnand %p264_p8, %p261_p7 }
 0x126   :  { %269 = shalt.err (!%p266_p9)
}
 0x127   :  { %175 = dma.vmem_to_hbm [thread:$0]  %s173_s12, 256, %s400_s2, [#allocation4]   ;;  %v155_v61 = vpop.permute.xlu1 %154  ;;  %v153_v62 = vpop.permute.xlu0 %152  ;;  %v150_v1 = vmul.f32 %v148_v59, %v133_v43  ;;  %v151_v2 = vmul.f32 %v149_v60, %v137_v44 }
 0x128   :  { %v156_v63 = vsel %vm102_vm2, %v153_v62, %v155_v61  ;;  %v157_v0 = vsel %vm102_vm2, %v155_v61, %v153_v62  ;;  %s307_s23 = smov [#allocation8]  }
 0x129   :  { %s182_s24 = sshll.u32 %s307_s23, 4  ;;  %v158_v3 = vmul.f32 %v157_v0, %v109_v34  ;;  %v159_v5 = vmul.f32 %v156_v63, %v113_v35  ;;  %s183_s24 = int_to_ptr.vmem [resolvable:$true] %s182_s24 }
 0x12a   :  { %s270_s2 = scalar_lea.vmem %s183_s24, 256  ;;  %p275_p11 = scmp.lt.s32.totalorder %s183_s24, %s183_s24 }
 0x12b   :  { %v160_v6 = vsub.f32 %v150_v1, %v158_v3  ;;  %v161_v7 = vsub.f32 %v151_v2, %v159_v5  ;;  %p271_p10 = scmp.ne.s32.totalorder %s183_s24, %s270_s2  ;;  %p276_p12 = scmp.lt.s32.totalorder %s270_s2, %s270_s2 }
 0x12d   :  { %164 = vst [vmem:[#allocation8] sm:$0xff] %v160_v6  ;;  %165 = vst [vmem:[#allocation8 + $0x8] sm:$0xff] %v161_v7  ;;  %p277_p13 = por %p276_p12, %p275_p11 }
 0x12f   :  { %p278_p0 = pnand %p277_p13, %p271_p10 }
 0x131   :  { %281 = shalt.err (!%p278_p0)
}
 0x132   :  { %s282_s27 = scalar_lea.hbm %s401_s3, 256 }
 0x133   :  { %p283_p1 = scmp.ne.s32.totalorder %s401_s3, %s282_s27  ;;  %p286_p2 = scmp.lt.u32.totalorder %s282_s27, %s401_s3 }
 0x135   :  { %p288_p3 = pnand %p286_p2, %p283_p1 }
 0x137   :  { %291 = shalt.err (!%p288_p3)
}
 0x138   :  { %185 = dma.vmem_to_hbm [thread:$0]  %s183_s24, 256, %s401_s3, [#allocation9]  }
 0x139   :  { %296 = dma.done.wait [#allocation4], 256  }
 0x13a   :  { %297 = vsyncadd [#allocation4], 4294967040 }
 0x13b   :  { %298 = dma.done.wait [#allocation9], 256  }
 0x13c   :  { %299 = vsyncadd [#allocation9], 4294967040 }
 0x13d   :  { %192 = vsyncpa [#allocation3], 1 }
 0x13e   :  { %193 = vsyncpa [#allocation6], 1 }
 0x13f   :  { %194 = vsyncpa [#allocation4], 1 }
 0x140   :  { %195 = vsyncpa [#allocation9], 1 }

</bundles_post_ra>
